<compile_context>
chip_gen: v6e
topology: v6e:2x2x1
jax: 0.10.0
libtpu: 0.0.40
codegen_flags: <defaults>
</compile_context>

<pallas_src>
import functools

import jax
import jax.numpy as jnp
from jax.experimental import pallas as pl
from jax.experimental.pallas import tpu as pltpu


def _dmap_loss_kernel(x_ref, lbl_ref, dm_ref, out_ref, acc_ref, *,
                      hw, tn, n_inner, nj, numclass, fold):
    """Per-tile hot path.

    x_ref   : (C, TN)   logits for TN pixels of one batch element
    lbl_ref : (1, TN)   i32 class labels
    dm_ref  : (1, TN)   distance-map values (raw, 0..255 scale)
    out_ref : (8, 128)  per-(batch, outer-group) partial sum (epilogue only)
    acc_ref : (1, 128)  (fold mode) or (1, TN) f32 running accumulator
    """
    inner = pl.program_id(2)
    j_global = pl.program_id(1) * n_inner + inner

    @pl.when(inner == 0)
    def _():
        acc_ref[...] = jnp.zeros_like(acc_ref)

    logits = x_ref[...].astype(jnp.float32)                       # (C, TN)
    lbl = lbl_ref[...]                                            # (1, TN)
    dm = dm_ref[...].astype(jnp.float32)                          # (1, TN)

    # log-sum-exp over the class (sublane) axis — all per-lane reductions.
    m = jnp.max(logits, axis=0, keepdims=True)                    # (1, TN)
    se = jnp.sum(jnp.exp(logits - m), axis=0, keepdims=True)      # (1, TN)
    lse = m + jnp.log(se)

    # Fused soft-one-hot weighted sum: w_c = 1.0 at the true class, 0.1 elsewhere
    # (onehot + 0.1 clamped to 1).  One class reduction instead of two.
    cls_iota = jax.lax.broadcasted_iota(jnp.int32, logits.shape, 0)
    wx = jnp.where(cls_iota == lbl, logits, 0.1 * logits)         # (C, TN)
    ws = jnp.sum(wx, axis=0, keepdims=True)                       # (1, TN)

    # sum_c softlabel*logsm = (dm/255) * (ws - (0.1*C + 0.9) * lse)
    contrib = (dm * (1.0 / 255.0)) * (ws - (0.1 * numclass + 0.9) * lse)

    def _accumulate(v):
        if fold:
            # Lane-aligned log2 fold (1, tn) -> (1, 128).  Every slice boundary
            # is a multiple of 128 lanes -> one vreg per slice, pure VPU adds,
            # no relayout, and the resident accumulator stays one vreg wide.
            width = tn
            while width > 128:
                width //= 2
                v = v[:, :width] + v[:, width:2 * width]
        acc_ref[...] = acc_ref[...] + v

    if hw % tn == 0:
        _accumulate(contrib)
    else:
        # Only the last global tile is partial; mask work runs only there.
        @pl.when(j_global < nj - 1)
        def _():
            _accumulate(contrib)

        @pl.when(j_global == nj - 1)
        def _():
            pix = j_global * tn + jax.lax.broadcasted_iota(jnp.int32, (1, tn), 1)
            # per-lane select (NOT a multiply) so NaN/Inf from garbage lanes
            # beyond the real pixel count cannot propagate.
            _accumulate(jnp.where(pix < hw, contrib, 0.0))

    @pl.when(inner == pl.num_programs(2) - 1)
    def _():
        out_ref[...] = jnp.full(out_ref.shape, jnp.sum(acc_ref[...]),
                                dtype=out_ref.dtype)


@functools.partial(jax.jit, static_argnames=("numclass", "tile"))
def distance_map_loss(x, label, distancemap, numclass=21, tile=32768):
    """x: (B, C, H, W), label: (B, H, W) int, distancemap: (B, H, W).

    Inputs are fed through in their source dtypes (bf16 logits / uint8 distance
    map are fine); the kernel upcasts to f32 on load.
    """
    B, C, H, W = x.shape
    assert C == numclass
    HW = H * W

    # Layout glue is free: trailing-dim reshapes only (no transpose, no pad,
    # no dtype upcast).
    x_r = x.reshape(B, C, HW)
    lbl_r = label.astype(jnp.int32).reshape(B, 1, HW)
    dm_r = distancemap.reshape(B, 1, HW)

    x_bytes = x.dtype.itemsize
    dm_bytes = dm_r.dtype.itemsize

    def _sublane_pad(rows, itemsize):
        t = 8 * max(1, 4 // itemsize)            # 8 (f32/i32), 16 (bf16), 32 (i8)
        return -(-rows // t) * t

    def _working_set(tn):
        # Double-buffered per-step VMEM working set (BlockSpec pipelining).
        logits_b = 2 * _sublane_pad(C, x_bytes) * tn * x_bytes
        lbl_b = 2 * _sublane_pad(1, 4) * tn * 4
        dm_b = 2 * _sublane_pad(1, dm_bytes) * tn * dm_bytes
        acc_b = 8 * 128 * 4
        out_b = 2 * 8 * 128 * 4
        return logits_b + lbl_b + dm_b + acc_b + out_b

    VMEM_BUDGET = 24 * 1024 * 1024   # working-set budget (headroom under limit)
    VMEM_LIMIT = 32 * 1024 * 1024    # safe on v5e/v6e (128 MiB) and v7x (64 MiB)

    # Lane-aligned, power-of-two-chunk tile, capped by the VMEM budget.
    chunks = 1 << max(0, (max(tile, 128) // 128).bit_length() - 1)
    while chunks > 1 and _working_set(128 * chunks) > VMEM_BUDGET:
        chunks //= 2
    tn_cap = 128 * chunks

    if HW <= tn_cap:
        tn, nj = HW, 1               # single tile: block == full pixel axis
    else:
        tn, nj = tn_cap, pl.cdiv(HW, tn_cap)

    # Megacore coverage: if B alone cannot be split evenly across 2 TensorCores,
    # split the pixel-tile axis into an outer parallel dimension as well.
    n_outer = 2 if (B % 2 == 1 and nj % 2 == 0 and nj >= 2) else 1
    n_inner = nj // n_outer

    # (1,128) folded accumulator whenever tn is 128 * 2^k (always true in the
    # multi-tile path); otherwise fall back to a (1, tn) accumulator.
    fold = (tn % 128 == 0) and ((tn // 128) & ((tn // 128) - 1) == 0)
    acc_shape = (1, 128) if fold else (1, tn)

    kernel = functools.partial(_dmap_loss_kernel, hw=HW, tn=tn, n_inner=n_inner,
                               nj=nj, numclass=C, fold=fold)

    cost = pl.CostEstimate(
        flops=int(B * HW * (6 * C + 10)),
        transcendentals=int(B * HW * (C + 1)),
        bytes_accessed=int(B * HW * (C * x_bytes + 4 + dm_bytes)
                           + B * n_outer * 8 * 128 * 4),
    )

    partials = pl.pallas_call(
        kernel,
        out_shape=jax.ShapeDtypeStruct((B, n_outer, 8, 128), jnp.float32),
        grid_spec=pltpu.PrefetchScalarGridSpec(
            num_scalar_prefetch=0,
            grid=(B, n_outer, n_inner),
            in_specs=[
                pl.BlockSpec((None, C, tn),
                             lambda b, o, i: (b, 0, o * n_inner + i)),  # logits
                pl.BlockSpec((None, 1, tn),
                             lambda b, o, i: (b, 0, o * n_inner + i)),  # labels
                pl.BlockSpec((None, 1, tn),
                             lambda b, o, i: (b, 0, o * n_inner + i)),  # dist map
            ],
            out_specs=pl.BlockSpec((None, None, 8, 128),
                                   lambda b, o, i: (b, o, 0, 0)),
            scratch_shapes=[pltpu.VMEM(acc_shape, jnp.float32)],
        ),
        compiler_params=pltpu.CompilerParams(
            dimension_semantics=("parallel", "parallel", "arbitrary"),
            vmem_limit_bytes=VMEM_LIMIT),
        cost_estimate=cost,
    )(x_r, lbl_r, dm_r)

    total = jnp.sum(partials[:, :, 0, 0])

    # NOTE: the double division by B is intentional — it matches the PyTorch
    # reference: loss = -mean_over_(B,H,W)(per-pixel sum) / batchsize.
    return -(total / jnp.float32(B * HW)) / jnp.float32(B)


def _reference_loss(x, label, distancemap, numclass=21):
    """Pure-JAX reference mirroring the PyTorch forward (for verification)."""
    B = x.shape[0]
    logsm = jax.nn.log_softmax(x.astype(jnp.float32), axis=1)        # (B,C,H,W)
    oh = jax.nn.one_hot(label, numclass, axis=1, dtype=jnp.float32)  # (B,C,H,W)
    oh = jnp.minimum(oh + 0.1, 1.0)
    soft = (distancemap.astype(jnp.float32) / 255.0)[:, None] * oh
    per_pix = jnp.sum(soft * logsm, axis=1)                          # (B,H,W)
    return -jnp.mean(per_pix) / B


if __name__ == "__main__":
    numclass = 21
    B, H, W = 2, 16, 16

    key = jax.random.PRNGKey(0)
    kx, kl, kd = jax.random.split(key, 3)
    x = jax.random.normal(kx, (B, numclass, H, W), dtype=jnp.float32)
    label = jax.random.randint(kl, (B, H, W), 0, numclass, dtype=jnp.int32)
    distancemap = jax.random.uniform(kd, (B, H, W), dtype=jnp.float32,
                                     minval=0.0, maxval=255.0)

    loss = distance_map_loss(x, label, distancemap, numclass=numclass)
    loss = jax.block_until_ready(loss)

    ref = jax.block_until_ready(_reference_loss(x, label, distancemap, numclass))
    assert jnp.allclose(loss, ref, rtol=1e-4, atol=1e-6), (loss, ref)

    print("KERNEL_OK")
</pallas_src>

<mosaic_0001>
module attributes {stable_mosaic.version = 11 : i64} {
  func.func @_dmap_loss_kernel(%arg0: i32, %arg1: i32, %arg2: i32, %arg3: memref<1x21x256xf32, #tpu.memory_space<vmem>>, %arg4: memref<1x1x256xi32, #tpu.memory_space<vmem>>, %arg5: memref<1x1x256xf32, #tpu.memory_space<vmem>>, %arg6: memref<1x1x8x128xf32, #tpu.memory_space<vmem>>, %arg7: memref<1x128xf32, #tpu.memory_space<vmem>>) attributes {dimension_semantics = [#tpu.dimension_semantics<parallel>, #tpu.dimension_semantics<parallel>, #tpu.dimension_semantics<arbitrary>], iteration_bounds = array<i64: 2, 1, 1>, scalar_prefetch = 0 : i64, scratch_operands = 1 : i64, tpu.core_type = #tpu.core_type<tc>, window_params = [{transform_indices = @transform_0, window_bounds = array<i64: 1, 21, 256>}, {transform_indices = @transform_1, window_bounds = array<i64: 1, 1, 256>}, {transform_indices = @transform_2, window_bounds = array<i64: 1, 1, 256>}, {transform_indices = @transform_3, window_bounds = array<i64: 1, 1, 8, 128>}]} {
    %c0_i32 = arith.constant 0 : i32
    %0 = arith.cmpi eq, %arg2, %c0_i32 : i32
    %1 = arith.extui %0 : i1 to i32
    %c0_i32_0 = arith.constant 0 : i32
    %2 = arith.cmpi ne, %1, %c0_i32_0 : i32
    scf.if %2 {
      %cst_20 = arith.constant 0.000000e+00 : f32
      %41 = vector.broadcast %cst_20 : f32 to vector<1x128xf32>
      %c0_21 = arith.constant 0 : index
      %c0_22 = arith.constant 0 : index
      %42 = vector.load %arg7[%c0_21, %c0_22] : memref<1x128xf32, #tpu.memory_space<vmem>>, vector<1x128xf32>
      tpu.vector_store %arg7[%c0_21, %c0_22], %41 {strides = array<i32>} : memref<1x128xf32, #tpu.memory_space<vmem>>, vector<1x128xf32>,
    } else {
    }
    %c0 = arith.constant 0 : index
    %c0_1 = arith.constant 0 : index
    %c0_2 = arith.constant 0 : index
    %3 = vector.load %arg3[%c0, %c0_1, %c0_2] : memref<1x21x256xf32, #tpu.memory_space<vmem>>, vector<1x21x256xf32>
    %4 = vector.shape_cast %3 : vector<1x21x256xf32> to vector<21x256xf32>
    %c0_3 = arith.constant 0 : index
    %c0_4 = arith.constant 0 : index
    %c0_5 = arith.constant 0 : index
    %5 = vector.load %arg4[%c0_3, %c0_4, %c0_5] : memref<1x1x256xi32, #tpu.memory_space<vmem>>, vector<1x1x256xi32>
    %6 = vector.shape_cast %5 : vector<1x1x256xi32> to vector<1x256xi32>
    %c0_6 = arith.constant 0 : index
    %c0_7 = arith.constant 0 : index
    %c0_8 = arith.constant 0 : index
    %7 = vector.load %arg5[%c0_6, %c0_7, %c0_8] : memref<1x1x256xf32, #tpu.memory_space<vmem>>, vector<1x1x256xf32>
    %8 = vector.shape_cast %7 : vector<1x1x256xf32> to vector<1x256xf32>
    %cst = arith.constant dense<0xFF800000> : vector<256xf32>
    %9 = vector.multi_reduction <maximumf>, %4, %cst [0] : vector<21x256xf32> to vector<256xf32>
    %10 = vector.shape_cast %9 : vector<256xf32> to vector<1x256xf32>
    %11 = vector.broadcast %10 : vector<1x256xf32> to vector<21x256xf32>
    %12 = arith.subf %4, %11 : vector<21x256xf32>
    %13 = math.exp %12 : vector<21x256xf32>
    %cst_9 = arith.constant dense<0.000000e+00> : vector<256xf32>
    %14 = vector.multi_reduction <add>, %13, %cst_9 [0] : vector<21x256xf32> to vector<256xf32>
    %15 = vector.shape_cast %14 : vector<256xf32> to vector<1x256xf32>
    %16 = math.log %15 : vector<1x256xf32>
    %17 = arith.addf %10, %16 : vector<1x256xf32>
    %18 = tpu.iota {dimensions = array<i32: 0>} : vector<21x256xi32>
    %19 = vector.broadcast %6 : vector<1x256xi32> to vector<21x256xi32>
    %20 = arith.cmpi eq, %18, %19 : vector<21x256xi32>
    %cst_10 = arith.constant 1.000000e-01 : f32
    %21 = vector.broadcast %cst_10 : f32 to vector<21x256xf32>
    %22 = arith.mulf %21, %4 : vector<21x256xf32>
    %23 = arith.select %20, %4, %22 : vector<21x256xi1>, vector<21x256xf32>
    %cst_11 = arith.constant dense<0.000000e+00> : vector<256xf32>
    %24 = vector.multi_reduction <add>, %23, %cst_11 [0] : vector<21x256xf32> to vector<256xf32>
    %25 = vector.shape_cast %24 : vector<256xf32> to vector<1x256xf32>
    %cst_12 = arith.constant 0.00392156886 : f32
    %26 = vector.broadcast %cst_12 : f32 to vector<1x256xf32>
    %27 = arith.mulf %8, %26 : vector<1x256xf32>
    %cst_13 = arith.constant 3.000000e+00 : f32
    %28 = vector.broadcast %cst_13 : f32 to vector<1x256xf32>
    %29 = arith.mulf %28, %17 : vector<1x256xf32>
    %30 = arith.subf %25, %29 : vector<1x256xf32>
    %31 = arith.mulf %27, %30 : vector<1x256xf32>
    %32 = vector.extract_strided_slice %31 {offsets = [0, 0], sizes = [1, 128], strides = [1, 1]} : vector<1x256xf32> to vector<1x128xf32>
    %33 = vector.extract_strided_slice %31 {offsets = [0, 128], sizes = [1, 128], strides = [1, 1]} : vector<1x256xf32> to vector<1x128xf32>
    %34 = arith.addf %32, %33 : vector<1x128xf32>
    %c0_14 = arith.constant 0 : index
    %c0_15 = arith.constant 0 : index
    %35 = vector.load %arg7[%c0_14, %c0_15] : memref<1x128xf32, #tpu.memory_space<vmem>>, vector<1x128xf32>
    %36 = arith.addf %35, %34 : vector<1x128xf32>
    %c0_16 = arith.constant 0 : index
    %c0_17 = arith.constant 0 : index
    %37 = vector.load %arg7[%c0_16, %c0_17] : memref<1x128xf32, #tpu.memory_space<vmem>>, vector<1x128xf32>
    tpu.vector_store %arg7[%c0_16, %c0_17], %36 {strides = array<i32>} : memref<1x128xf32, #tpu.memory_space<vmem>>, vector<1x128xf32>,
    %c0_i32_18 = arith.constant 0 : i32
    %38 = arith.cmpi eq, %arg2, %c0_i32_18 : i32
    %39 = arith.extui %38 : i1 to i32
    %c0_i32_19 = arith.constant 0 : i32
    %40 = arith.cmpi ne, %39, %c0_i32_19 : i32
    scf.if %40 {
      %c0_20 = arith.constant 0 : index
      %c0_21 = arith.constant 0 : index
      %41 = vector.load %arg7[%c0_20, %c0_21] : memref<1x128xf32, #tpu.memory_space<vmem>>, vector<1x128xf32>
      %42 = vector.shape_cast %41 : vector<1x128xf32> to vector<1x1x128xf32>
      %cst_22 = arith.constant dense<0.000000e+00> : vector<1xf32>
      %43 = vector.multi_reduction <add>, %42, %cst_22 [1, 2] : vector<1x1x128xf32> to vector<1xf32>
      %44 = vector.shape_cast %43 : vector<1xf32> to vector<1x1x1xf32>
      %45 = vector.extract %44[0, 0, 0] : f32 from vector<1x1x1xf32>
      %46 = vector.broadcast %45 : f32 to vector<8x128xf32>
      %c0_23 = arith.constant 0 : index
      %c0_24 = arith.constant 0 : index
      %c0_25 = arith.constant 0 : index
      %c0_26 = arith.constant 0 : index
      %47 = vector.load %arg6[%c0_23, %c0_24, %c0_25, %c0_26] : memref<1x1x8x128xf32, #tpu.memory_space<vmem>>, vector<1x1x8x128xf32>
      %48 = vector.shape_cast %47 : vector<1x1x8x128xf32> to vector<8x128xf32>
      %49 = vector.shape_cast %46 : vector<8x128xf32> to vector<1x1x8x128xf32>
      tpu.vector_store %arg6[%c0_23, %c0_24, %c0_25, %c0_26], %49 {strides = array<i32>} : memref<1x1x8x128xf32, #tpu.memory_space<vmem>>, vector<1x1x8x128xf32>,
    } else {
    }
    return
  }
  func.func @transform_0(%arg0: i32, %arg1: i32, %arg2: i32) -> (i32, i32, i32) {
    %c1_i32 = arith.constant 1 : i32
    %0 = arith.muli %arg1, %c1_i32 : i32
    %1 = arith.addi %0, %arg2 : i32
    %c0_i32 = arith.constant 0 : i32
    %c0_i32_0 = arith.constant 0 : i32
    return %arg0, %c0_i32, %1 : i32, i32, i32
  }
  func.func @transform_1(%arg0: i32, %arg1: i32, %arg2: i32) -> (i32, i32, i32) {
    %c1_i32 = arith.constant 1 : i32
    %0 = arith.muli %arg1, %c1_i32 : i32
    %1 = arith.addi %0, %arg2 : i32
    %c0_i32 = arith.constant 0 : i32
    %c0_i32_0 = arith.constant 0 : i32
    return %arg0, %c0_i32, %1 : i32, i32, i32
  }
  func.func @transform_2(%arg0: i32, %arg1: i32, %arg2: i32) -> (i32, i32, i32) {
    %c1_i32 = arith.constant 1 : i32
    %0 = arith.muli %arg1, %c1_i32 : i32
    %1 = arith.addi %0, %arg2 : i32
    %c0_i32 = arith.constant 0 : i32
    %c0_i32_0 = arith.constant 0 : i32
    return %arg0, %c0_i32, %1 : i32, i32, i32
  }
  func.func @transform_3(%arg0: i32, %arg1: i32, %arg2: i32) -> (i32, i32, i32, i32) {
    %c0_i32 = arith.constant 0 : i32
    %c0_i32_0 = arith.constant 0 : i32
    %c0_i32_1 = arith.constant 0 : i32
    return %arg0, %arg1, %c0_i32, %c0_i32_0 : i32, i32, i32, i32
  }
}

</mosaic_0001>

<bundles_post_ra>
// kernel: distance_map_loss.1
= control target key start
LH: loop header
LB: loop body
LE: loop exit
PB: predicated region body
PF: predicated region fallthrough
CT: control target
= control target key end

     0   :  { %s681_s12 = smov 0   ;;  %s683_s13 = smov 0   ;;  %s794_s0 = inlined_call_operand.vmem [shape: f32[2,21,256], index: 0, kind: input, shape index: {}]   ;;  %s795_s1 = inlined_call_operand.vmem [shape: s32[2,1,256], index: 1, kind: input, shape index: {}]   ;;  %s796_s2 = inlined_call_operand.vmem [shape: f32[2,1,256], index: 2, kind: input, shape index: {}]   ;;  %s797_s3 = inlined_call_operand.vmem [shape: f32[2,1,8,128], index: 3, kind: output, shape index: {}]  }
   0x1   :  { %s685_s14 = smov 0  }
   0x2 LB: > { %s32_s15 = sadd.s32 1, %s653_s13  ;;  %p583_p0 = scmp.ge.s32.totalorder %s657_s14, 1  ;;  %s657_s14 = sphi %s685_s14, %s13_s14   ;;  %s653_s13 = sphi %s683_s13, %s799_s13   ;;  %s649_s12 = sphi %s681_s12, %s798_s12  }
   0x3   : > { %p34_p1 = scmp.ge.s32.totalorder %s32_s15, 2  ;;  %p209_p2 = scmp.lt.s32.totalorder %s657_s14, 3 }
   0x5   : > { %s801_s15 = smov (%p34_p1, %s32_s15), 0  ;;  %p210_p3 = pnand %p583_p0, %p209_p2 }
   0x6   : > { %p260_p4 = scmp.lt.s32.totalorder (!%p210_p3), %s649_s12, 1 }
   0x7   : > { %213 = sbr.rel (%p210_p3) target bundleno = 320 (0x140), region = 32 }
   0xc   : > { %v659_v0 = vmov 0.0   ;;  %s803_s12 = smov (!%p260_p4, %s649_s12), 1  ;;  %vm312_vm0 = vcmask 1044480   ;;  %v373_v34 = vlaneseq  ;;  %vm456_vm7 = vcmask 1040384  }
   0xd   : > { %303 = vst [vmem:[#allocation2] sm:$0x1] %v659_v0  ;;  %s590_s16 = smul.u32 48, %s803_s12  ;;  %s585_s20 = sshll.u32 %s803_s12, 1 }
   0xe   : > { %v742_v38 = vshrl.u32 %v373_v34, 7  ;;  %s278_s23 = scalar_lea.vmem %s795_s1, %s585_s20  ;;  %s289_s26 = scalar_lea.vmem %s796_s2, %s585_s20 }
   0xf   : > { %s267_s19 = scalar_lea.vmem %s794_s0, %s590_s16  ;;  %v310_v40 = vld [vmem:[%s278_s23] sm:$0x3]  ;;  %s587_s27 = sshll.u32 %s803_s12, 3 }
  0x10   : > { %v705_v1 = vld [vmem:[%s267_s19] sm:$0xff]  ;;  %v707_v2 = vld [vmem:[%s267_s19 + $0x8] sm:$0xff]  ;;  %v713_v5 = vld [vmem:[%s267_s19 + $0x10] sm:$0xff]  ;;  %v379_v39 = vsub.s32 0, %v742_v38  ;;  %v383_v41 = vsub.s32 1, %v742_v38  ;;  %v375_v43 = vadd.s32 8, %v742_v38  ;;  %s298_s30 = scalar_lea.vmem %s797_s3, %s587_s27 }
  0x11   : > { %v709_v3 = vld [vmem:[%s267_s19 + $0x20] sm:$0x1f]  ;;  %v711_v4 = vld [vmem:[%s267_s19 + $0x28] sm:$0x1f]  ;;  %v715_v6 = vld [vmem:[%s267_s19 + $0x18] sm:$0xff]  ;;  %v376_v45 = vadd.s32 16, %v742_v38 }
  0x12   : > { %v313_v7 = vsel %vm312_vm0, %v709_v3, -inf  ;;  %v322_v8 = vsel %vm312_vm0, %v711_v4, -inf  ;;  %v380_v42 = vrot.slane %v310_v40, %v379_v39  ;;  %v384_v44 = vrot.slane %v310_v40, %v383_v41 }
  0x13   : > { %v314_v9 = vmax.f32 %v705_v1, %v313_v7  ;;  %v323_v10 = vmax.f32 %v707_v2, %v322_v8  ;;  %v391_v48 = vmul.f32 0.1, %v705_v1  ;;  %v392_v49 = vmul.f32 0.1, %v707_v2 }
  0x14   : > { %vm385_vm1 = vcmp.eq.s32.totalorder %v742_v38, %v380_v42  ;;  %v393_v50 = vmul.f32 0.1, %v713_v5  ;;  %vm386_vm2 = vcmp.eq.s32.totalorder %v742_v38, %v384_v44  ;;  %vm387_vm3 = vcmp.eq.s32.totalorder %v375_v43, %v380_v42 }
  0x15   : > { %v315_v11 = vmax.f32 %v314_v9, %v713_v5  ;;  %v324_v12 = vmax.f32 %v323_v10, %v715_v6  ;;  %v394_v52 = vmul.f32 0.1, %v715_v6  ;;  %v395_v53 = vmul.f32 0.1, %v709_v3 }
  0x16   : > { %vm388_vm4 = vcmp.eq.s32.totalorder %v375_v43, %v384_v44  ;;  %vm389_vm5 = vcmp.eq.s32.totalorder %v376_v45, %v380_v42  ;;  %v396_v56 = vmul.f32 0.1, %v711_v4  ;;  %vm390_vm6 = vcmp.eq.s32.totalorder %v376_v45, %v384_v44 }
  0x17   : > { %v316_v13 = vrot.slane %v315_v11, 4  ;;  %v325_v14 = vrot.slane %v324_v12, 4  ;;  %v397_v61 = vsel %vm385_vm1, %v705_v1, %v391_v48  ;;  %v398_v62 = vsel %vm386_vm2, %v707_v2, %v392_v49 }
  0x18   : > { %v399_v63 = vsel %vm387_vm3, %v713_v5, %v393_v50  ;;  %v400_v8 = vsel %vm388_vm4, %v715_v6, %v394_v52  ;;  %v401_v9 = vsel %vm389_vm5, %v709_v3, %v395_v53  ;;  %v311_v53 = vld [vmem:[%s289_s26] sm:$0x3] }
  0x19   : > { %v317_v15 = vmax.f32 %v315_v11, %v316_v13  ;;  %v326_v16 = vmax.f32 %v324_v12, %v325_v14  ;;  %v402_v11 = vsel %vm390_vm6, %v711_v4, %v396_v56  ;;  %v403_v13 = vadd.f32 %v399_v63, %v397_v61 }
  0x1b   : > { %v318_v17 = vrot.slane %v317_v15, 2  ;;  %v327_v18 = vrot.slane %v326_v16, 2 }
  0x1d   : > { %v319_v19 = vmax.f32 %v317_v15, %v318_v17  ;;  %v328_v20 = vmax.f32 %v326_v16, %v327_v18  ;;  %v404_v15 = vsel %vm312_vm0, %v401_v9, 0.0 }
  0x1e   : > { %v405_v18 = vadd.f32 %v404_v15, %v403_v13 }
  0x1f   : > { %v320_v21 = vrot.slane %v319_v19, 1  ;;  %v329_v22 = vrot.slane %v328_v20, 1 }
  0x21   : > { %v725_v23 = vmax.f32 %v319_v19, %v320_v21  ;;  %v727_v24 = vmax.f32 %v328_v20, %v329_v22  ;;  %v406_v22 = vrot.slane %v405_v18, 4 }
  0x23   : > { %v331_v25 = vsub.f32 %v705_v1, %v725_v23  ;;  %v332_v26 = vsub.f32 %v707_v2, %v727_v24  ;;  %v333_v27 = vsub.f32 %v713_v5, %v725_v23  ;;  %v334_v28 = vsub.f32 %v715_v6, %v727_v24 }
  0x24   : > { %v335_v29 = vsub.f32 %v709_v3, %v725_v23  ;;  %v336_v30 = vsub.f32 %v711_v4, %v727_v24  ;;  %v412_v1 = vadd.f32 %v400_v8, %v398_v62  ;;  %v413_v2 = vsel %vm312_vm0, %v402_v11, 0.0 }
  0x25   : > { %v337_v31 = vmul.f32 1.442695, %v331_v25  ;;  %v339_v32 = vmul.f32 1.442695, %v332_v26  ;;  %v341_v33 = vmul.f32 1.442695, %v333_v27 }
  0x26   : > { %v343_v35 = vmul.f32 1.442695, %v334_v28  ;;  %v345_v36 = vmul.f32 1.442695, %v335_v29  ;;  %v347_v37 = vmul.f32 1.442695, %v336_v30  ;;  %v414_v20 = vadd.f32 %v413_v2, %v412_v1 }
  0x27   : > { %619 = vpow2.f32 %v337_v31  ;;  %v407_v28 = vadd.f32 %v406_v22, %v405_v18 }
  0x28   : > { %621 = vpow2.f32 %v339_v32  ;;  %v415_v4 = vrot.slane %v414_v20, 4 }
  0x29   : > { %623 = vpow2.f32 %v341_v33  ;;  %v408_v30 = vrot.slane %v407_v28, 2 }
  0x2a   : > { %625 = vpow2.f32 %v343_v35  ;;  %v416_v29 = vadd.f32 %v415_v4, %v414_v20 }
  0x2b   : > { %627 = vpow2.f32 %v345_v36  ;;  %v409_v32 = vadd.f32 %v408_v30, %v407_v28 }
  0x2c   : > { %629 = vpow2.f32 %v347_v37  ;;  %v417_v31 = vrot.slane %v416_v29, 2  ;;  %v660_v37 = vmov 1966171168  }
  0x2d   : > { %v410_v34 = vrot.slane %v409_v32, 1  ;;  %v430_v39 = vunpack.c.l.s4 %v660_v37 }
  0x2e   : > { %v418_v33 = vadd.f32 %v417_v31, %v416_v29 }
  0x2f   : > { %v411_v44 = vadd.f32 %v410_v34, %v409_v32 }
  0x30   : > { %v419_v36 = vrot.slane %v418_v33, 1 }
  0x34   : > { %v620_v46 = vpop.eup %619 }
  0x35   : > { %v622_v47 = vpop.eup %621 }
  0x36   : > { %v624_v51 = vpop.eup %623 }
  0x37   : > { %v626_v54 = vpop.eup %625  ;;  %v349_v55 = vadd.f32 %v624_v51, %v620_v46  ;;  %v420_v46 = vadd.f32 %v419_v36, %v418_v33 }
  0x38   : > { %v628_v57 = vpop.eup %627  ;;  %v358_v58 = vadd.f32 %v626_v54, %v622_v47  ;;  %v431_v47 = vunpack.c.0.s8 %v430_v39 }
  0x39   : > { %v630_v59 = vpop.eup %629  ;;  %v350_v60 = vsel %vm312_vm0, %v628_v57, 0.0 }
  0x3a   : > { %v351_v0 = vadd.f32 %v350_v60, %v349_v55  ;;  %v359_v7 = vsel %vm312_vm0, %v630_v59, 0.0  ;;  %v434_v52 = vsub.s32 %v431_v47, %v742_v38  ;;  %v421_v55 = vmul.f32 0.003921569, %v311_v53 }
  0x3b   : > { %v360_v10 = vadd.f32 %v359_v7, %v358_v58  ;;  %v449_v58 = vld [vmem:[#allocation2] sm:$0x1] }
  0x3c   : > { %v352_v12 = vrot.slane %v351_v0, 4 }
  0x3d   : > { %v361_v14 = vrot.slane %v360_v10, 4 }
  0x3e   : > { %v353_v16 = vadd.f32 %v352_v12, %v351_v0 }
  0x3f   : > { %v362_v5 = vadd.f32 %v361_v14, %v360_v10 }
  0x40   : > { %v354_v17 = vrot.slane %v353_v16, 2 }
  0x41   : > { %v363_v19 = vrot.slane %v362_v5, 2 }
  0x42   : > { %v355_v6 = vadd.f32 %v354_v17, %v353_v16 }
  0x43   : > { %v364_v21 = vadd.f32 %v363_v19, %v362_v5 }
  0x44   : > { %v356_v3 = vrot.slane %v355_v6, 1 }
  0x45   : > { %v365_v25 = vrot.slane %v364_v21, 1 }
  0x46   : > { %v357_v26 = vadd.f32 %v356_v3, %v355_v6 }
  0x47   : > { %v366_v27 = vadd.f32 %v365_v25, %v364_v21 }
  0x48   : > { %631 = vlog2.f32 %v357_v26 }
  0x49   : > { %633 = vlog2.f32 %v366_v27 }
  0x55   : > { %v632_v35 = vpop.eup %631 }
  0x56   : > { %v634_v40 = vpop.eup %633  ;;  %v368_v41 = vmul.f32 0.6931472, %v632_v35 }
  0x57   : > { %v370_v42 = vmul.f32 0.6931472, %v634_v40 }
  0x58   : > { %v371_v43 = vadd.f32 %v368_v41, %v725_v23 }
  0x59   : > { %v372_v45 = vadd.f32 %v370_v42, %v727_v24 }
  0x5a   : > { %v422_v48 = vmul.f32 3.0, %v371_v43 }
  0x5b   : > { %v423_v49 = vmul.f32 3.0, %v372_v45 }
  0x5c   : > { %v424_v50 = vsub.f32 %v411_v44, %v422_v48 }
  0x5d   : > { %v425_v51 = vsub.f32 %v420_v46, %v423_v49 }
  0x5f   : > { %v428_v54 = vcombine.low %v424_v50, %v425_v51 }
  0x61   : > { %v435_v23 = vrot.slane %v428_v54, %v434_v52 }
  0x63   : > { %v442_v56 = vrot.slane %v435_v23, %v434_v52 }
  0x65   : > { %v444_v57 = vmul.f32 %v442_v56, %v421_v55 }
  0x67   : > { %v446_v24 = vrot.slane %v444_v57, 1 }
  0x69   : > { %v448_v59 = vadd.f32 %v446_v24, %v444_v57 }
  0x6b   : > { %v450_v60 = vadd.f32 %v449_v58, %v448_v59 }
  0x6d   : > { %451 = vst [vmem:[#allocation2] sm:$0x1] %v450_v60 }
  0x74   : > { %v455_v61 = vld [vmem:[#allocation2] sm:$0x1] }
  0x75   : > { %v457_v62 = vsel %vm456_vm7, %v455_v61, 0.0 }
  0x76   : > { %458 = vadd.xlane.f32.xlu0 %v457_v62 }
  0xff   : > { %v459_v63 = vpop.xlane.xlu0 %458 }
 0x100   : > { %v460_v0 = vrot.slane %v459_v63, 4 }
 0x102   : > { %v461_v7 = vadd.f32 %v460_v0, %v459_v63 }
 0x104   : > { %v462_v38 = vrot.slane %v461_v7, 2 }
 0x106   : > { %v463_v8 = vadd.f32 %v462_v38, %v461_v7 }
 0x108   : > { %v464_v9 = vrot.slane %v463_v8, 1 }
 0x10a   : > { %v465_v10 = vadd.f32 %v464_v9, %v463_v8 }
 0x10c   : > { %591 = vpush %v465_v10 }
 0x13d   : > { %s592_s4 = spop %591 }
 0x13e   : > { %v467_v11 = vstv %s592_s4 }
 0x13f   : > { %468 = vst [vmem:[%s298_s30] sm:$0xff] %v467_v11 }
 0x140 PF: > { %s13_s14 = sadd.s32 1, %s657_s14   ;;  %s798_s12 = smov %s653_s13 }
 0x141   : > { %p10_p5 = scmp.ge.s32.totalorder %s13_s14, 4   ;;  %s799_s13 = smov %s801_s15 }
 0x143   :  { %12 = sbr.rel (!%p10_p5) target bundleno = 2 (0x2), region = 76 }

</bundles_post_ra>
